<compile_context>
chip_gen: v5e
topology: v5e:2x2
jax: 0.10.0
libtpu: 0.0.40
codegen_flags: <defaults>
</compile_context>

<pallas_src>
import functools

import jax
import jax.numpy as jnp
from jax.experimental import pallas as pl
from jax.experimental.pallas import tpu as pltpu


def _shadow_mlp_kernel(x_ref, w1_ref, b1_ref, w2_ref, b2_ref, w3_ref, b3_ref, o_ref):
    """Fused 3-layer MLP forward for one batch tile (weights fully VMEM-resident).

    x arrives as f32 (single DMA from the caller's buffer) and is cast to bf16 on the
    VPU; all matmuls are bf16 MXU operands with f32 accumulation; bias add + ReLU stay
    f32 (v5e has no bf16 VPU path).
    """
    x = x_ref[...].astype(w1_ref.dtype)  # (block_b, F) f32 -> bf16 in-register

    # Layer 1: Linear + ReLU
    h1 = jnp.dot(x, w1_ref[...], preferred_element_type=jnp.float32) + b1_ref[...]
    h1 = jnp.maximum(h1, 0.0)

    # Layer 2: Linear + ReLU
    h2 = jnp.dot(h1.astype(w2_ref.dtype), w2_ref[...],
                 preferred_element_type=jnp.float32) + b2_ref[...]
    h2 = jnp.maximum(h2, 0.0)

    # Output head: Linear -> logits, stored as (block_b, C) f32 (C = full last dim).
    o_ref[...] = jnp.dot(h2.astype(w3_ref.dtype), w3_ref[...],
                         preferred_element_type=jnp.float32) + b3_ref[...]


def _round_up(x, m):
    return ((x + m - 1) // m) * m


def _choose_block_and_pad(batch, max_block_b):
    """Pick (block_b, padded_batch).

    - Small batches: one tile covering the whole batch (block == full dim, no padding,
      no per-step overhead — important on single-TC v5e/v6e and tiny-batch v7x calls).
    - B >= 512 (and <= max_block_b): split into exactly 2 parallel steps so each v7x
      TensorCore gets >= 256 rows; harmless on single-TC chips at this size.
    - Larger batches: tile at max_block_b (multiple of 8), pad batch up to a multiple.
    """
    if batch <= max_block_b:
        if batch >= 512:
            block_b = _round_up((batch + 1) // 2, 8)
            return block_b, 2 * block_b
        return batch, batch
    block_b = max_block_b
    return block_b, _round_up(batch, block_b)


def prepare_params(params, mxu_dtype=jnp.bfloat16):
    """One-time weight prep (call once, reuse across forward calls).

    Weights -> bf16 MXU operands, biases -> f32 (1, N).  No padding needed: every
    weight/bias block equals its full array, and the contraction dims here (32/64)
    are already sublane-aligned.
    """
    def bias2d(b):
        b = jnp.asarray(b, jnp.float32)
        return b.reshape(1, -1) if b.ndim == 1 else b

    return {
        "w1": jnp.asarray(params["w1"], mxu_dtype),
        "b1": bias2d(params["b1"]),
        "w2": jnp.asarray(params["w2"], mxu_dtype),
        "b2": bias2d(params["b2"]),
        "w3": jnp.asarray(params["w3"], mxu_dtype),
        "b3": bias2d(params["b3"]),
    }


@functools.partial(jax.jit, static_argnames=("max_block_b",))
def inference_model_forward(x, prepared, *, max_block_b=1024):
    """Shadow-model forward pass: logits = MLP(x).

    x: (B, num_features) float32 (any B).
    prepared: output of prepare_params() — bf16 weights, f32 biases.
    Returns (B, num_classes) float32 logits.
    """
    w1, b1 = prepared["w1"], prepared["b1"]
    w2, b2 = prepared["w2"], prepared["b2"]
    w3, b3 = prepared["w3"], prepared["b3"]

    B, F = x.shape
    H = w1.shape[1]
    C = w3.shape[1]

    block_b, B_pad = _choose_block_and_pad(B, max_block_b)
    x_in = x if B_pad == B else jnp.pad(x, ((0, B_pad - B), (0, 0)))

    # Advisory cost on real (unpadded-feature) dims.
    w_bytes = (w1.size + w2.size + w3.size) * jnp.dtype(w1.dtype).itemsize
    b_bytes = (b1.size + b2.size + b3.size) * 4
    flops = 2 * B_pad * (F * H + H * H + H * C)
    bytes_accessed = B_pad * F * 4 + w_bytes + b_bytes + B_pad * C * 4

    def full(a):  # grid-invariant whole-array block (stays resident in VMEM)
        return pl.BlockSpec(a.shape, lambda i: (0, 0))

    logits = pl.pallas_call(
        _shadow_mlp_kernel,
        out_shape=jax.ShapeDtypeStruct((B_pad, C), jnp.float32),
        grid_spec=pltpu.PrefetchScalarGridSpec(
            num_scalar_prefetch=0,
            grid=(B_pad // block_b,),
            in_specs=[
                pl.BlockSpec((block_b, F), lambda i: (i, 0)),  # x batch tile, f32
                full(w1), full(b1),
                full(w2), full(b2),
                full(w3), full(b3),
            ],
            out_specs=pl.BlockSpec((block_b, C), lambda i: (i, 0)),
        ),
        compiler_params=pltpu.CompilerParams(
            dimension_semantics=("parallel",),  # batch tiles may shard across v7x TCs
        ),
        cost_estimate=pl.CostEstimate(
            flops=flops, transcendentals=0, bytes_accessed=bytes_accessed),
    )(x_in, w1, b1, w2, b2, w3, b3)

    return logits if B_pad == B else logits[:B]


def make_shadow_params(key, num_features, hidden, num_classes):
    """Deterministic synthetic 'checkpoint' for the shadow model."""
    k1, k2, k3, k4, k5, k6 = jax.random.split(key, 6)
    scale1 = 1.0 / jnp.sqrt(num_features)
    scale2 = 1.0 / jnp.sqrt(hidden)
    return {
        "w1": jax.random.normal(k1, (num_features, hidden), jnp.float32) * scale1,
        "b1": jax.random.normal(k2, (1, hidden), jnp.float32) * 0.01,
        "w2": jax.random.normal(k3, (hidden, hidden), jnp.float32) * scale2,
        "b2": jax.random.normal(k4, (1, hidden), jnp.float32) * 0.01,
        "w3": jax.random.normal(k5, (hidden, num_classes), jnp.float32) * scale2,
        "b3": jax.random.normal(k6, (1, num_classes), jnp.float32) * 0.01,
    }


def reference_forward(x, params, mxu_dtype=jnp.bfloat16):
    """Pure-JAX reference with matching bf16-MXU / f32-accumulate semantics."""
    def dense(a, w, b):
        return jnp.dot(a.astype(mxu_dtype), w.astype(mxu_dtype),
                       preferred_element_type=jnp.float32) + b
    h1 = jnp.maximum(dense(x, params["w1"], params["b1"]), 0.0)
    h2 = jnp.maximum(dense(h1, params["w2"], params["b2"]), 0.0)
    return dense(h2, params["w3"], params["b3"])


if __name__ == "__main__":
    key = jax.random.PRNGKey(0)
    kx, kp, kx2 = jax.random.split(key, 3)

    batch = 16          # small example batch (single-tile path)
    num_features = 32   # tabular feature count
    hidden = 64         # shadow_capacity -> hidden width
    num_classes = 16    # logits per class

    x = jax.random.normal(kx, (batch, num_features), jnp.float32)
    params = make_shadow_params(kp, num_features, hidden, num_classes)
    prepared = prepare_params(params)   # one-time weight prep, reused across calls

    logits = jax.block_until_ready(inference_model_forward(x, prepared))
    ref = reference_forward(x, params)
    assert logits.shape == (batch, num_classes)
    assert jnp.allclose(logits, ref, atol=1e-2, rtol=1e-2), "mismatch vs reference (small)"

    # Exercise the large-batch path (row padding + 2-step megacore split).
    x_big = jax.random.normal(kx2, (600, num_features), jnp.float32)
    logits_big = jax.block_until_ready(inference_model_forward(x_big, prepared))
    ref_big = reference_forward(x_big, params)
    assert logits_big.shape == (600, num_classes)
    assert jnp.allclose(logits_big, ref_big, atol=1e-2, rtol=1e-2), "mismatch vs reference (big)"

    print("KERNEL_OK")
</pallas_src>

<mosaic_0001>
module attributes {stable_mosaic.version = 11 : i64} {
  func.func @_shadow_mlp_kernel(%arg0: i32, %arg1: memref<16x32xf32, #tpu.memory_space<vmem>>, %arg2: memref<32x64xbf16, #tpu.memory_space<vmem>>, %arg3: memref<1x64xf32, #tpu.memory_space<vmem>>, %arg4: memref<64x64xbf16, #tpu.memory_space<vmem>>, %arg5: memref<1x64xf32, #tpu.memory_space<vmem>>, %arg6: memref<64x16xbf16, #tpu.memory_space<vmem>>, %arg7: memref<1x16xf32, #tpu.memory_space<vmem>>, %arg8: memref<16x16xf32, #tpu.memory_space<vmem>>) attributes {dimension_semantics = [#tpu.dimension_semantics<parallel>], iteration_bounds = array<i64: 1>, scalar_prefetch = 0 : i64, scratch_operands = 0 : i64, tpu.core_type = #tpu.core_type<tc>, window_params = [{transform_indices = @transform_0, window_bounds = array<i64: 16, 32>}, {pipeline_mode = #tpu.pipeline_mode<synchronous>, transform_indices = @transform_1, window_bounds = array<i64: 32, 64>}, {pipeline_mode = #tpu.pipeline_mode<synchronous>, transform_indices = @transform_2, window_bounds = array<i64: 1, 64>}, {pipeline_mode = #tpu.pipeline_mode<synchronous>, transform_indices = @transform_3, window_bounds = array<i64: 64, 64>}, {pipeline_mode = #tpu.pipeline_mode<synchronous>, transform_indices = @transform_4, window_bounds = array<i64: 1, 64>}, {pipeline_mode = #tpu.pipeline_mode<synchronous>, transform_indices = @transform_5, window_bounds = array<i64: 64, 16>}, {pipeline_mode = #tpu.pipeline_mode<synchronous>, transform_indices = @transform_6, window_bounds = array<i64: 1, 16>}, {transform_indices = @transform_7, window_bounds = array<i64: 16, 16>}]} {
    %c0 = arith.constant 0 : index
    %c0_0 = arith.constant 0 : index
    %0 = vector.load %arg1[%c0, %c0_0] : memref<16x32xf32, #tpu.memory_space<vmem>>, vector<16x32xf32>
    %1 = arith.truncf %0 : vector<16x32xf32> to vector<16x32xbf16>
    %c0_1 = arith.constant 0 : index
    %c0_2 = arith.constant 0 : index
    %2 = vector.load %arg2[%c0_1, %c0_2] : memref<32x64xbf16, #tpu.memory_space<vmem>>, vector<32x64xbf16>
    %cst = arith.constant dense<0.000000e+00> : vector<16x64xf32>
    %3 = tpu.matmul %1, %2, %cst {dimension_numbers = #tpu.dot_dimension_numbers<[1], [0], [0], [1], [0, 0, 1, 1], [], []>} : vector<16x32xbf16>, vector<32x64xbf16>, vector<16x64xf32> -> vector<16x64xf32>
    %c0_3 = arith.constant 0 : index
    %c0_4 = arith.constant 0 : index
    %4 = vector.load %arg3[%c0_3, %c0_4] : memref<1x64xf32, #tpu.memory_space<vmem>>, vector<1x64xf32>
    %5 = vector.broadcast %4 : vector<1x64xf32> to vector<16x64xf32>
    %6 = arith.addf %3, %5 : vector<16x64xf32>
    %cst_5 = arith.constant 0.000000e+00 : f32
    %7 = vector.broadcast %cst_5 : f32 to vector<16x64xf32>
    %8 = arith.maximumf %6, %7 : vector<16x64xf32>
    %9 = arith.truncf %8 : vector<16x64xf32> to vector<16x64xbf16>
    %c0_6 = arith.constant 0 : index
    %c0_7 = arith.constant 0 : index
    %10 = vector.load %arg4[%c0_6, %c0_7] : memref<64x64xbf16, #tpu.memory_space<vmem>>, vector<64x64xbf16>
    %cst_8 = arith.constant dense<0.000000e+00> : vector<16x64xf32>
    %11 = tpu.matmul %9, %10, %cst_8 {dimension_numbers = #tpu.dot_dimension_numbers<[1], [0], [0], [1], [0, 0, 1, 1], [], []>} : vector<16x64xbf16>, vector<64x64xbf16>, vector<16x64xf32> -> vector<16x64xf32>
    %c0_9 = arith.constant 0 : index
    %c0_10 = arith.constant 0 : index
    %12 = vector.load %arg5[%c0_9, %c0_10] : memref<1x64xf32, #tpu.memory_space<vmem>>, vector<1x64xf32>
    %13 = vector.broadcast %12 : vector<1x64xf32> to vector<16x64xf32>
    %14 = arith.addf %11, %13 : vector<16x64xf32>
    %cst_11 = arith.constant 0.000000e+00 : f32
    %15 = vector.broadcast %cst_11 : f32 to vector<16x64xf32>
    %16 = arith.maximumf %14, %15 : vector<16x64xf32>
    %17 = arith.truncf %16 : vector<16x64xf32> to vector<16x64xbf16>
    %c0_12 = arith.constant 0 : index
    %c0_13 = arith.constant 0 : index
    %18 = vector.load %arg6[%c0_12, %c0_13] : memref<64x16xbf16, #tpu.memory_space<vmem>>, vector<64x16xbf16>
    %cst_14 = arith.constant dense<0.000000e+00> : vector<16x16xf32>
    %19 = tpu.matmul %17, %18, %cst_14 {dimension_numbers = #tpu.dot_dimension_numbers<[1], [0], [0], [1], [0, 0, 1, 1], [], []>} : vector<16x64xbf16>, vector<64x16xbf16>, vector<16x16xf32> -> vector<16x16xf32>
    %c0_15 = arith.constant 0 : index
    %c0_16 = arith.constant 0 : index
    %20 = vector.load %arg7[%c0_15, %c0_16] : memref<1x16xf32, #tpu.memory_space<vmem>>, vector<1x16xf32>
    %21 = vector.broadcast %20 : vector<1x16xf32> to vector<16x16xf32>
    %22 = arith.addf %19, %21 : vector<16x16xf32>
    %c0_17 = arith.constant 0 : index
    %c0_18 = arith.constant 0 : index
    %23 = vector.load %arg8[%c0_17, %c0_18] : memref<16x16xf32, #tpu.memory_space<vmem>>, vector<16x16xf32>
    tpu.vector_store %arg8[%c0_17, %c0_18], %22 {strides = array<i32>} : memref<16x16xf32, #tpu.memory_space<vmem>>, vector<16x16xf32>,
    return
  }
  func.func @transform_0(%arg0: i32) -> (i32, i32) {
    %c0_i32 = arith.constant 0 : i32
    %c0_i32_0 = arith.constant 0 : i32
    return %arg0, %c0_i32 : i32, i32
  }
  func.func @transform_1(%arg0: i32) -> (i32, i32) {
    %c0_i32 = arith.constant 0 : i32
    %c0_i32_0 = arith.constant 0 : i32
    %c0_i32_1 = arith.constant 0 : i32
    return %c0_i32, %c0_i32_0 : i32, i32
  }
  func.func @transform_2(%arg0: i32) -> (i32, i32) {
    %c0_i32 = arith.constant 0 : i32
    %c0_i32_0 = arith.constant 0 : i32
    %c0_i32_1 = arith.constant 0 : i32
    return %c0_i32, %c0_i32_0 : i32, i32
  }
  func.func @transform_3(%arg0: i32) -> (i32, i32) {
    %c0_i32 = arith.constant 0 : i32
    %c0_i32_0 = arith.constant 0 : i32
    %c0_i32_1 = arith.constant 0 : i32
    return %c0_i32, %c0_i32_0 : i32, i32
  }
  func.func @transform_4(%arg0: i32) -> (i32, i32) {
    %c0_i32 = arith.constant 0 : i32
    %c0_i32_0 = arith.constant 0 : i32
    %c0_i32_1 = arith.constant 0 : i32
    return %c0_i32, %c0_i32_0 : i32, i32
  }
  func.func @transform_5(%arg0: i32) -> (i32, i32) {
    %c0_i32 = arith.constant 0 : i32
    %c0_i32_0 = arith.constant 0 : i32
    %c0_i32_1 = arith.constant 0 : i32
    return %c0_i32, %c0_i32_0 : i32, i32
  }
  func.func @transform_6(%arg0: i32) -> (i32, i32) {
    %c0_i32 = arith.constant 0 : i32
    %c0_i32_0 = arith.constant 0 : i32
    %c0_i32_1 = arith.constant 0 : i32
    return %c0_i32, %c0_i32_0 : i32, i32
  }
  func.func @transform_7(%arg0: i32) -> (i32, i32) {
    %c0_i32 = arith.constant 0 : i32
    %c0_i32_0 = arith.constant 0 : i32
    return %arg0, %c0_i32 : i32, i32
  }
}

</mosaic_0001>

<bundles_post_ra>
// kernel: inference_model_forward.1
= control target key start
LH: loop header
LB: loop body
LE: loop exit
PB: predicated region body
PF: predicated region fallthrough
CT: control target
= control target key end

     0   :  { %12 = vsyncpa [#allocation3], 0  ;;  %s475_s0 = inlined_call_operand.hbm [shape: f32[16,32], index: 0, kind: input, shape index: {}]   ;;  %s476_s1 = inlined_call_operand.hbm [shape: bf16[32,64], index: 1, kind: input, shape index: {}]   ;;  %s477_s2 = inlined_call_operand.vmem [shape: f32[1,64], index: 2, kind: input, shape index: {}]   ;;  %s478_s3 = inlined_call_operand.vmem [shape: bf16[64,64], index: 3, kind: input, shape index: {}]   ;;  %s479_s4 = inlined_call_operand.vmem [shape: f32[1,64], index: 4, kind: input, shape index: {}]   ;;  %s480_s5 = inlined_call_operand.vmem [shape: bf16[64,16], index: 5, kind: input, shape index: {}]   ;;  %s481_s6 = inlined_call_operand.vmem [shape: f32[1,16], index: 6, kind: input, shape index: {}]   ;;  %s482_s7 = inlined_call_operand.hbm [shape: f32[16,16], index: 7, kind: output, shape index: {}]  }
   0x1   :  { %13 = vsyncpa [#allocation6], 0 }
   0x2   :  { %14 = vsyncpa [#allocation4], 0  ;;  %s19_s26 = sshll.u32 %s475_s0, 4  ;;  %s378_s27 = smov [#allocation2]   ;;  %s20_s26 = int_to_ptr.hbm [resolvable:$true] %s19_s26 }
   0x3   :  { %s21_s28 = sshll.u32 %s378_s27, 4  ;;  %s32_s8 = sshll.u32 %s476_s1, 4  ;;  %s22_s28 = int_to_ptr.vmem [resolvable:$true] %s21_s28  ;;  %s33_s8 = int_to_ptr.hbm [resolvable:$true] %s32_s8 }
   0x4   :  { %s379_s9 = smov 128   ;;  %s380_s10 = smov 8  }
   0x5   :  { %27 = dma.hbm_to_vmem [thread:$0]  %s20_s26, 256, %s22_s28, [#allocation3], %s379_s9, %s379_s9, %s380_s10  }
   0x6   :  { %s381_s11 = smov [#allocation5]   ;;  %s382_s13 = smov 64  }
   0x7   :  { %s34_s12 = sshll.u32 %s381_s11, 4  ;;  %s383_s0 = smov 4   ;;  %s35_s12 = int_to_ptr.vmem [resolvable:$true] %s34_s12 }
   0x8   :  { %40 = dma.hbm_to_vmem [thread:$0]  %s33_s8, 256, %s35_s12, [#allocation6], %s382_s13, %s382_s13, %s383_s0  }
   0x9   :  { %372 = dma.done.wait [#allocation3], 256  }
   0xa   :  { %373 = vsyncadd [#allocation3], 4294967040 }
   0xb   :  { %374 = dma.done.wait [#allocation6], 256  }
   0xc   :  { %375 = vsyncadd [#allocation6], 4294967040  ;;  %v281_v0 = vld [vmem:[#allocation5 + $0x8] sm:$0xff]  ;;  %v280_v1 = vld [vmem:[#allocation5] sm:$0xff]  ;;  %vm83_vm0 = vcmask 261120   ;;  %vm140_vm1 = vcmask 523264  }
   0xd   :  { %v60_v2 = vld [vmem:[#allocation2] sm:$0xff]  ;;  %93 = vmatpush.bf16.msra.mxu0 %v281_v0  ;;  %v61_v3 = vld [vmem:[#allocation2 + $0x8] sm:$0xff]  ;;  %v285_v5 = vld [vmem:[%s478_s3 + $0x18] sm:$0xff]  ;;  %vm214_vm2 = vcmask 130048   ;;  %s223_s0 = sshll.u32 %s482_s7, 4  ;;  %s224_s0 = int_to_ptr.hbm [resolvable:$true] %s223_s0 }
   0xe   :  { %v62_v4 = vpack.c.bf16 %v61_v3, %v60_v2  ;;  %148 = vmatpush.bf16.msra.mxu1 %v285_v5  ;;  %v284_v6 = vld [vmem:[%s478_s3 + $0x10] sm:$0xff]  ;;  %v283_v7 = vld [vmem:[%s478_s3 + $0x8] sm:$0xff]  ;;  %v282_v8 = vld [vmem:[%s478_s3] sm:$0xff] }
   0xf   :  { %v297_v10 = vld [vmem:[%s477_s2] ss:$0 sm:$0xff]  ;;  %v289_v17 = vld [vmem:[%s480_s5 + $0x18] sm:$0xff]  ;;  %v288_v18 = vld [vmem:[%s480_s5 + $0x10] sm:$0xff] }
  0x10   :  { %204 = vmatpush.bf16.msra.mxu2 %v289_v17  ;;  %v287_v19 = vld [vmem:[%s480_s5 + $0x8] sm:$0xff]  ;;  %v286_v20 = vld [vmem:[%s480_s5] sm:$0xff]  ;;  %s384_s5 = smov [#allocation7]  }
  0x11   :  { %94 = vmatpush.bf16.msra.mxu0 %v280_v1  ;;  %v298_v22 = vld [vmem:[%s479_s4] ss:$0 sm:$0xff]  ;;  %s221_s12 = sshll.u32 %s384_s5, 4  ;;  %s222_s12 = int_to_ptr.vmem [resolvable:$true] %s221_s12 }
  0x12   :  { %149 = vmatpush.bf16.msra.mxu1 %v284_v6  ;;  %v299_v29 = vld [vmem:[%s481_s6] ss:$0 sm:$0xff] }
  0x14   :  { %245 = vmatmul.msk.bf16.vlgmr.msra.gmra.mxu0 %vm83_vm0, %v62_v4  ;;  %205 = vmatpush.bf16.msra.mxu2 %v288_v18 }
  0x16   :  { %150 = vmatpush.bf16.msra.mxu1 %v283_v7 }
  0x18   :  { %206 = vmatpush.bf16.msra.mxu2 %v287_v19 }
  0x1a   :  { %151 = vmatpush.bf16.msra.mxu1 %v282_v8 }
  0x1c   :  { %207 = vmatpush.bf16.msra.mxu2 %v286_v20 }
  0x91   :  { %v96_v9 = vpop.f32.mrf.mxu0 }
  0x92   :  { %v97_v11 = vadd.f32 %v297_v10, %v96_v9 }
  0x94   :  { %v101_v14 = vmax.f32 %v97_v11, 0.0 }
  0x99   :  { %v98_v12 = vpop.f32.mrf.mxu0 }
  0x9a   :  { %v99_v13 = vadd.f32 %v297_v10, %v98_v12 }
  0x9c   :  { %v102_v15 = vmax.f32 %v99_v13, 0.0 }
  0x9e   :  { %v103_v16 = vpack.c.bf16 %v102_v15, %v101_v14 }
  0xa0   :  { %262 = vmatmul.msk.bf16.vlgmr.msra.gmra.mxu1 %vm140_vm1, %v103_v16 }
 0x11d   :  { %v153_v21 = vpop.f32.mrf.mxu1 }
 0x11e   :  { %v154_v23 = vadd.f32 %v298_v22, %v153_v21 }
 0x120   :  { %v158_v26 = vmax.f32 %v154_v23, 0.0 }
 0x125   :  { %v155_v24 = vpop.f32.mrf.mxu1 }
 0x126   :  { %v156_v25 = vadd.f32 %v298_v22, %v155_v24 }
 0x128   :  { %v159_v27 = vmax.f32 %v156_v25, 0.0 }
 0x12a   :  { %v160_v28 = vpack.c.bf16 %v159_v27, %v158_v26 }
 0x12c   :  { %279 = vmatmul.msk.bf16.vlgmr.msra.gmra.mxu2 %vm140_vm1, %v160_v28 }
 0x1af   :  { %v209_v30 = vpop.f32.mrf.mxu2 }
 0x1b0   :  { %v210_v31 = vadd.f32 %v299_v29, %v209_v30 }
 0x1b2   :  { %215 = vst.msk [vmem:[#allocation7] sm:$0xff] %vm214_vm2, %v210_v31 }
 0x1b7   :  { %v211_v32 = vpop.f32.mrf.mxu2 }
 0x1b8   :  { %v212_v33 = vadd.f32 %v299_v29, %v211_v32 }
 0x1ba   :  { %216 = vst.msk [vmem:[#allocation7 + $0x8] sm:$0xff] %vm214_vm2, %v212_v33 }
 0x1bb   :  { %229 = dma.vmem_to_hbm [thread:$0]  %s222_s12, 256, %s224_s0, [#allocation4], %s379_s9, %s379_s9, %s380_s10  }
 0x1bc   :  { %376 = dma.done.wait [#allocation4], 256  }
 0x1bd   :  { %377 = vsyncadd [#allocation4], 4294967040 }
 0x1be   :  { %234 = vsyncpa [#allocation3], 1 }
 0x1bf   :  { %235 = vsyncpa [#allocation6], 1 }
 0x1c0   :  { %236 = vsyncpa [#allocation4], 1 }

</bundles_post_ra>
